<compile_context>
chip_gen: v7x
topology: tpu7x:2x2x1
jax: 0.10.0
libtpu: 0.0.40
codegen_flags: <defaults>
</compile_context>

<pallas_src>
import jax
import jax.numpy as jnp
from jax import lax
from jax.experimental import pallas as pl
from jax.experimental.pallas import tpu as pltpu


def _round_up(x, m):
    return ((x + m - 1) // m) * m


def _gather_tile_kernel(labels_ref, table_ref, out_ref):
    """Gather TILE_N rows of the VMEM-resident table via a one-hot MXU matmul.

    labels_ref: (1, 1, TILE_N) int32  -- labels for this tile
    table_ref:  (rows_pad, cond_pad)  -- full embedding table, VMEM resident
    out_ref:    (TILE_N, cond_pad)
    """
    rows_pad = table_ref.shape[0]
    tile_n = out_ref.shape[0]

    lbl = labels_ref[0]  # (1, TILE_N) int32
    # one_hot[r, t] = (r == labels[t]); row index lives on sublanes so no
    # lane<->sublane transpose of the label vector is needed.
    row_ids = lax.broadcasted_iota(jnp.int32, (rows_pad, tile_n), 0)
    one_hot = (row_ids == lbl).astype(table_ref.dtype)  # (rows_pad, TILE_N)

    # out = one_hot^T @ table  -> (TILE_N, cond_pad); exact gather (0/1 weights).
    out_ref[...] = lax.dot_general(
        one_hot,
        table_ref[...],
        dimension_numbers=(((0,), (0,)), ((), ())),
        preferred_element_type=jnp.float32,
    ).astype(out_ref.dtype)


def label_embedder_forward(labels, embedding_table, *, tile_n=128):
    """Pallas equivalent of LabelEmbedder.forward.

    labels:           int array, any shape
    embedding_table:  (num_classes + 1, cond_size) float array
    returns:          labels.shape + (cond_size,)
    """
    orig_shape = labels.shape
    labels_flat = labels.reshape(-1).astype(jnp.int32)
    n = labels_flat.shape[0]
    rows, cond = embedding_table.shape
    dtype = embedding_table.dtype

    # Alignment padding: lanes (last dim) to 128, sublanes (rows) to 8.
    cond_pad = _round_up(cond, 128)
    rows_pad = _round_up(rows, 8)
    n_pad = _round_up(max(n, 1), tile_n)
    num_tiles = n_pad // tile_n

    table_bytes = rows_pad * cond_pad * dtype.itemsize
    if table_bytes > 12 * 1024 * 1024:
        # TODO(synk): for tables too large for VMEM residency (v7x scoped VMEM
        # default is 32 MiB and BlockSpec inputs are double-buffered), switch
        # to a manual double-buffered HBM row gather (memory_space=pl.ANY +
        # pltpu.make_async_copy, with label dedup).
        return embedding_table[labels]

    table_p = jnp.pad(embedding_table, ((0, rows_pad - rows), (0, cond_pad - cond)))
    # (num_tiles, 1, TILE_N): keeps the last-two block dims (1, TILE_N) legal
    # (1 == full middle dim, TILE_N % 128 == 0). Padded labels use row 0
    # (always a valid index); their output rows are sliced away below.
    labels_p = jnp.pad(labels_flat, (0, n_pad - n)).reshape(num_tiles, 1, tile_n)

    cost = pl.CostEstimate(
        flops=2 * n_pad * rows_pad * cond_pad,               # one-hot matmul
        transcendentals=0,
        bytes_accessed=(n_pad * cond_pad * dtype.itemsize      # output
                        + rows_pad * cond_pad * dtype.itemsize  # table (read once)
                        + n_pad * 4),                           # labels
    )

    out_p = pl.pallas_call(
        _gather_tile_kernel,
        out_shape=jax.ShapeDtypeStruct((n_pad, cond_pad), dtype),
        grid_spec=pltpu.PrefetchScalarGridSpec(
            num_scalar_prefetch=0,
            grid=(num_tiles,),
            in_specs=[
                # Labels for tile i.
                pl.BlockSpec((1, 1, tile_n), lambda i: (i, 0, 0)),
                # Full table, constant block index -> fetched once, VMEM resident.
                pl.BlockSpec((rows_pad, cond_pad), lambda i: (0, 0)),
            ],
            out_specs=pl.BlockSpec((tile_n, cond_pad), lambda i: (i, 0)),
        ),
        compiler_params=pltpu.CompilerParams(
            dimension_semantics=("parallel",),
        ),
        cost_estimate=cost,
    )(labels_p, table_p)

    out = out_p[:n, :cond]
    return out.reshape(*orig_shape, cond)


if __name__ == "__main__":
    num_classes = 16
    cond_size = 128          # lane-aligned embedding width

    key = jax.random.PRNGKey(0)
    k_table, k_labels = jax.random.split(key)

    # nn.Embedding default init: N(0, 1)
    embedding_table = jax.random.normal(
        k_table, (num_classes + 1, cond_size), dtype=jnp.float32
    )

    # labels: (batch=2, seq=8), values in [0, num_classes] (num_classes == CFG "null" class)
    labels = jax.random.randint(
        k_labels, (2, 8), minval=0, maxval=num_classes + 1, dtype=jnp.int32
    )

    out = label_embedder_forward(labels, embedding_table)
    out = jax.block_until_ready(out)

    # Reference check against plain JAX gather (one-hot matmul gather is exact).
    ref = embedding_table[labels]
    assert out.shape == (2, 8, cond_size), out.shape
    assert jnp.allclose(out, ref), "mismatch vs reference embedding lookup"

    print("KERNEL_OK")
</pallas_src>

<mosaic_0001>
module attributes {stable_mosaic.version = 11 : i64} {
  func.func @_gather_tile_kernel(%arg0: i32, %arg1: memref<1x1x128xi32, #tpu.memory_space<vmem>>, %arg2: memref<24x128xf32, #tpu.memory_space<vmem>>, %arg3: memref<128x128xf32, #tpu.memory_space<vmem>>) attributes {dimension_semantics = [#tpu.dimension_semantics<parallel>], iteration_bounds = array<i64: 1>, scalar_prefetch = 0 : i64, scratch_operands = 0 : i64, tpu.core_type = #tpu.core_type<tc>, window_params = [{transform_indices = @transform_0, window_bounds = array<i64: 1, 1, 128>}, {pipeline_mode = #tpu.pipeline_mode<synchronous>, transform_indices = @transform_1, window_bounds = array<i64: 24, 128>}, {transform_indices = @transform_2, window_bounds = array<i64: 128, 128>}]} {
    %c0 = arith.constant 0 : index
    %c0_0 = arith.constant 0 : index
    %c0_1 = arith.constant 0 : index
    %0 = vector.load %arg1[%c0, %c0_0, %c0_1] : memref<1x1x128xi32, #tpu.memory_space<vmem>>, vector<1x1x128xi32>
    %1 = vector.shape_cast %0 : vector<1x1x128xi32> to vector<1x128xi32>
    %2 = tpu.iota {dimensions = array<i32: 0>} : vector<24x128xi32>
    %3 = vector.broadcast %1 : vector<1x128xi32> to vector<24x128xi32>
    %4 = arith.cmpi eq, %2, %3 : vector<24x128xi32>
    %5 = arith.extui %4 : vector<24x128xi1> to vector<24x128xi32>
    %6 = arith.sitofp %5 : vector<24x128xi32> to vector<24x128xf32>
    %c0_2 = arith.constant 0 : index
    %c0_3 = arith.constant 0 : index
    %7 = vector.load %arg2[%c0_2, %c0_3] : memref<24x128xf32, #tpu.memory_space<vmem>>, vector<24x128xf32>
    %cst = arith.constant dense<0.000000e+00> : vector<128x128xf32>
    %8 = tpu.matmul %6, %7, %cst {dimension_numbers = #tpu.dot_dimension_numbers<[0], [0], [1], [1], [0, 1, 1, 1], [], []>} : vector<24x128xf32>, vector<24x128xf32>, vector<128x128xf32> -> vector<128x128xf32>
    %c0_4 = arith.constant 0 : index
    %c0_5 = arith.constant 0 : index
    %9 = vector.load %arg3[%c0_4, %c0_5] : memref<128x128xf32, #tpu.memory_space<vmem>>, vector<128x128xf32>
    tpu.vector_store %arg3[%c0_4, %c0_5], %8 {strides = array<i32>} : memref<128x128xf32, #tpu.memory_space<vmem>>, vector<128x128xf32>,
    return
  }
  func.func @transform_0(%arg0: i32) -> (i32, i32, i32) {
    %c0_i32 = arith.constant 0 : i32
    %c0_i32_0 = arith.constant 0 : i32
    %c0_i32_1 = arith.constant 0 : i32
    return %arg0, %c0_i32, %c0_i32_0 : i32, i32, i32
  }
  func.func @transform_1(%arg0: i32) -> (i32, i32) {
    %c0_i32 = arith.constant 0 : i32
    %c0_i32_0 = arith.constant 0 : i32
    %c0_i32_1 = arith.constant 0 : i32
    return %c0_i32, %c0_i32_0 : i32, i32
  }
  func.func @transform_2(%arg0: i32) -> (i32, i32) {
    %c0_i32 = arith.constant 0 : i32
    %c0_i32_0 = arith.constant 0 : i32
    return %arg0, %c0_i32 : i32, i32
  }
}

</mosaic_0001>

<bundles_post_ra>
// kernel: tpu_custom_call.1
= control target key start
LH: loop header
LB: loop body
LE: loop exit
PB: predicated region body
PF: predicated region fallthrough
CT: control target
= control target key end

     0   :  { %7 = vsyncpa [#allocation3], 0  ;;  %s560_s0 = inlined_call_operand.hbm [shape: s32[1,1,128], index: 0, kind: input, shape index: {}]   ;;  %s561_s1 = inlined_call_operand.hbm [shape: f32[24,128], index: 1, kind: input, shape index: {}]   ;;  %s562_s2 = inlined_call_operand.hbm [shape: f32[128,128], index: 2, kind: output, shape index: {}]  }
   0x1   :  { %8 = vsyncpa [#allocation6], 0 }
   0x2   :  { %9 = vsyncpa [#allocation4], 0  ;;  %s474_s9 = smov [#allocation2]   ;;  %s475_s11 = smov [#allocation5]  }
   0x3   :  { %s16_s10 = sshll.u32 %s474_s9, 4  ;;  %s25_s12 = sshll.u32 %s475_s11, 4  ;;  %s17_s10 = int_to_ptr.vmem [resolvable:$true] %s16_s10  ;;  %s495_s12 = int_to_ptr.vmem [resolvable:$true] %s25_s12 }
   0x4   :  { %s402_s15 = scalar_lea.hbm %s560_s0, 16 }
   0x5   :  { %p403_p0 = scmp.ne.s32.totalorder %s560_s0, %s402_s15  ;;  %p406_p1 = scmp.lt.u32.totalorder %s402_s15, %s560_s0 }
   0x7   :  { %p408_p2 = pnand %p406_p1, %p403_p0 }
   0x9   :  { %411 = shalt.err (!%p408_p2)
}
   0xa   :  { %s412_s20 = scalar_lea.vmem %s17_s10, 16  ;;  %s416_s21 = scalar_lea.vmem %s17_s10, 32 }
   0xb   :  { %p413_p3 = scmp.ne.s32.totalorder %s17_s10, %s412_s20  ;;  %p417_p4 = scmp.lt.s32.totalorder %s17_s10, %s17_s10 }
   0xc   :  { %p418_p5 = scmp.lt.s32.totalorder %s416_s21, %s412_s20 }
   0xe   :  { %p419_p6 = por %p418_p5, %p417_p4 }
  0x10   :  { %p420_p7 = pnand %p419_p6, %p413_p3 }
  0x12   :  { %423 = shalt.err (!%p420_p7)
}
  0x13   :  { %19 = dma.hbm_to_vmem [thread:$0]  %s560_s0, 16, %s17_s10, [#allocation3]  }
  0x14   :  { %s424_s26 = scalar_lea.hbm %s561_s1, 384 }
  0x15   :  { %p425_p8 = scmp.ne.s32.totalorder %s561_s1, %s424_s26  ;;  %p428_p9 = scmp.lt.u32.totalorder %s424_s26, %s561_s1 }
  0x17   :  { %p430_p10 = pnand %p428_p9, %p425_p8 }
  0x19   :  { %433 = shalt.err (!%p430_p10)
}
  0x1a   :  { %s434_s3 = scalar_lea.vmem %s495_s12, 384  ;;  %p439_p12 = scmp.lt.s32.totalorder %s495_s12, %s495_s12 }
  0x1b   :  { %p435_p11 = scmp.ne.s32.totalorder %s495_s12, %s434_s3  ;;  %p440_p13 = scmp.lt.s32.totalorder %s434_s3, %s434_s3 }
  0x1d   :  { %p441_p0 = por %p440_p13, %p439_p12 }
  0x1f   :  { %p442_p1 = pnand %p441_p0, %p435_p11 }
  0x21   :  { %445 = shalt.err (!%p442_p1)
}
  0x22   :  { %s476_s0 = smov 128   ;;  %s477_s4 = smov 8  }
  0x23   :  { %31 = dma.hbm_to_vmem [thread:$0]  %s561_s1, 384, %s495_s12, [#allocation6], %s476_s0, %s476_s0, %s477_s4  }
  0x24   :  { %468 = dma.done.wait [#allocation3], 16  }
  0x25   :  { %469 = vsyncadd [#allocation3], 4294967280 }
  0x26   :  { %470 = dma.done.wait [#allocation6], 384  }
  0x27   :  { %471 = vsyncadd [#allocation6], 4294966912  ;;  %v39_v0 = vlaneseq  ;;  %v319_v3 = vld [vmem:[#allocation2] ss:$0 sm:$0xff]  ;;  %v56_v4 = vld [vmem:[#allocation5] sm:$0xff]  ;;  %v478_v8 = vmov 0.0  }
  0x28   :  { %v57_v5 = vld [vmem:[#allocation5 + $0x8] sm:$0xff]  ;;  %v58_v11 = vld [vmem:[#allocation5 + $0x10] sm:$0xff]  ;;  %vm91_vm3 = vcmask 195584   ;;  %s479_s1 = smov [#allocation7]  }
  0x29   :  { %v40_v1 = vshrl.u32 %v39_v0, 7  ;;  %v388_v7 = vpack.c.bf16 %v57_v5, %v56_v4  ;;  %s306_s7 = sshll.u32 %s479_s1, 4  ;;  %s307_s7 = int_to_ptr.vmem [resolvable:$true] %s306_s7 }
  0x2a   :  { %s446_s8 = scalar_lea.vmem %s307_s7, 2048  ;;  %p451_p3 = scmp.lt.s32.totalorder %s307_s7, %s307_s7 }
  0x2b   :  { %v41_v2 = vadd.s32 8, %v40_v1  ;;  %vm47_vm0 = vcmp.eq.s32.totalorder %v40_v1, %v319_v3  ;;  %v42_v6 = vadd.s32 16, %v40_v1  ;;  %389 = vmatprep.subr.bf16.mxu0 %v388_v7  ;;  %392 = vmatprep.subr.bf16.mxu1 %v388_v7  ;;  %p447_p2 = scmp.ne.s32.totalorder %s307_s7, %s446_s8  ;;  %p452_p4 = scmp.lt.s32.totalorder %s446_s8, %s446_s8 }
  0x2c   :  { %v320_v9 = vsel %vm47_vm0, 1.0, %v478_v8  ;;  %391 = vmatpush3.bf16.msra.mxu0 %v388_v7  ;;  %394 = vmatpush3.bf16.msra.mxu1 %v388_v7 }
  0x2d   :  { %vm48_vm1 = vcmp.eq.s32.totalorder %v41_v2, %v319_v3  ;;  %59 = vxpose.xlu0.b32.start [1/3] (short) %v320_v9, 128  ;;  %vm49_vm2 = vcmp.eq.s32.totalorder %v42_v6, %v319_v3  ;;  %362 = vmatprep.subr.mxu0 %v58_v11  ;;  %p453_p5 = por %p452_p4, %p451_p3 }
  0x2e   :  { %v321_v10 = vsel %vm48_vm1, 1.0, %v478_v8  ;;  %393 = vmatprep.subr.mxu1 %v58_v11  ;;  %v322_v12 = vsel %vm49_vm2, 1.0, %v478_v8 }
  0x2f   :  { %p454_p6 = pnand %p453_p5, %p447_p2 }
  0x30   :  { %363 = vmatpush3.msra.mxu0 %v58_v11  ;;  %395 = vmatpush3.msra.mxu1 %v58_v11 }
  0x31   :  { %60 = vxpose.xlu0.b32.cont [2/3] (short) %v321_v10, 128 }
  0x35   :  { %61 = vxpose.xlu0.b32.end [3/3] (short) %v322_v12, 128 }
  0xad   :  { %v75_v13 = vpop.trf.xlu0 }
  0xae   :  { %364 = vmatprep.mubr.msk.f32.mxu0 %vm91_vm3, %v75_v13 }
  0xb1   :  { %v76_v14 = vpop.trf.xlu0 }
  0xb2   :  { %365 = vmatmul.mubr.msk.f32.vlgmr.msra.gmra.mrb[0].mxu0 %vm91_vm3, %v76_v14 }
  0xb5   :  { %v77_v15 = vpop.trf.xlu0 }
  0xb6   :  { %367 = vmatprep.mubr.msk.f32.mxu0 %vm91_vm3, %v77_v15 }
  0xb9   :  { %v78_v16 = vpop.trf.xlu0 }
  0xba   :  { %368 = vmatmul.mubr.msk.f32.gmra.mrb[2].mxu0 %vm91_vm3, %v78_v16 }
  0xbd   :  { %v79_v17 = vpop.trf.xlu0 }
  0xbe   :  { %370 = vmatprep.mubr.msk.f32.mxu0 %vm91_vm3, %v79_v17 }
  0xc1   :  { %v80_v18 = vpop.trf.xlu0 }
  0xc2   :  { %371 = vmatmul.mubr.msk.f32.gmra.mrb[4].mxu0 %vm91_vm3, %v80_v18 }
  0xc5   :  { %v81_v19 = vpop.trf.xlu0 }
  0xc6   :  { %373 = vmatprep.mubr.msk.f32.mxu0 %vm91_vm3, %v81_v19 }
  0xc9   :  { %v82_v20 = vpop.trf.xlu0 }
  0xca   :  { %374 = vmatmul.mubr.msk.f32.gmra.mrb[6].mxu0 %vm91_vm3, %v82_v20 }
  0xcd   :  { %v83_v21 = vpop.trf.xlu0 }
  0xce   :  { %376 = vmatprep.mubr.msk.f32.mxu1 %vm91_vm3, %v83_v21 }
  0xd1   :  { %v84_v22 = vpop.trf.xlu0 }
  0xd2   :  { %377 = vmatmul.mubr.msk.f32.vlgmr.msra.gmra.mrb[0].mxu1 %vm91_vm3, %v84_v22 }
  0xd5   :  { %v85_v23 = vpop.trf.xlu0 }
  0xd6   :  { %379 = vmatprep.mubr.msk.f32.mxu1 %vm91_vm3, %v85_v23 }
  0xd9   :  { %v86_v24 = vpop.trf.xlu0 }
  0xda   :  { %380 = vmatmul.mubr.msk.f32.gmra.mrb[2].mxu1 %vm91_vm3, %v86_v24 }
  0xdd   :  { %v87_v25 = vpop.trf.xlu0 }
  0xde   :  { %382 = vmatprep.mubr.msk.f32.mxu1 %vm91_vm3, %v87_v25 }
  0xe1   :  { %v88_v26 = vpop.trf.xlu0 }
  0xe2   :  { %383 = vmatmul.mubr.msk.f32.gmra.mrb[4].mxu1 %vm91_vm3, %v88_v26 }
  0xe5   :  { %v89_v27 = vpop.trf.xlu0 }
  0xe6   :  { %385 = vmatprep.mubr.msk.f32.mxu1 %vm91_vm3, %v89_v27 }
  0xe9   :  { %v90_v28 = vpop.trf.xlu0 }
  0xea   :  { %386 = vmatmul.mubr.msk.f32.gmra.mrb[6].mxu1 %vm91_vm3, %v90_v28 }
 0x185   :  { %v366_v29 = vpop.f32.mrb[0].mxu0 }
 0x186   :  { %286 = vst [vmem:[#allocation7 + $0x8] sm:$0xff] %v366_v29  ;;  %v206_v30 = vpop.f32.mrb[1].mxu0 }
 0x187   :  { %285 = vst [vmem:[#allocation7] sm:$0xff] %v206_v30 }
 0x18d   :  { %v369_v31 = vpop.f32.mrb[2].mxu0 }
 0x18e   :  { %288 = vst [vmem:[#allocation7 + $0x18] sm:$0xff] %v369_v31  ;;  %v216_v32 = vpop.f32.mrb[3].mxu0 }
 0x18f   :  { %287 = vst [vmem:[#allocation7 + $0x10] sm:$0xff] %v216_v32 }
 0x195   :  { %v372_v33 = vpop.f32.mrb[4].mxu0 }
 0x196   :  { %290 = vst [vmem:[#allocation7 + $0x28] sm:$0xff] %v372_v33  ;;  %v226_v34 = vpop.f32.mrb[5].mxu0 }
 0x197   :  { %289 = vst [vmem:[#allocation7 + $0x20] sm:$0xff] %v226_v34 }
 0x19d   :  { %v375_v35 = vpop.f32.mrb[6].mxu0 }
 0x19e   :  { %292 = vst [vmem:[#allocation7 + $0x38] sm:$0xff] %v375_v35  ;;  %v236_v36 = vpop.f32.mrb[7].mxu0 }
 0x19f   :  { %291 = vst [vmem:[#allocation7 + $0x30] sm:$0xff] %v236_v36 }
 0x1a5   :  { %v378_v37 = vpop.f32.mrb[0].mxu1 }
 0x1a6   :  { %294 = vst [vmem:[#allocation7 + $0x48] sm:$0xff] %v378_v37  ;;  %v246_v38 = vpop.f32.mrb[1].mxu1 }
 0x1a7   :  { %293 = vst [vmem:[#allocation7 + $0x40] sm:$0xff] %v246_v38 }
 0x1ad   :  { %v381_v39 = vpop.f32.mrb[2].mxu1 }
 0x1ae   :  { %296 = vst [vmem:[#allocation7 + $0x58] sm:$0xff] %v381_v39  ;;  %v256_v40 = vpop.f32.mrb[3].mxu1 }
 0x1af   :  { %295 = vst [vmem:[#allocation7 + $0x50] sm:$0xff] %v256_v40 }
 0x1b5   :  { %v384_v41 = vpop.f32.mrb[4].mxu1 }
 0x1b6   :  { %298 = vst [vmem:[#allocation7 + $0x68] sm:$0xff] %v384_v41  ;;  %v266_v42 = vpop.f32.mrb[5].mxu1 }
 0x1b7   :  { %297 = vst [vmem:[#allocation7 + $0x60] sm:$0xff] %v266_v42 }
 0x1bd   :  { %v387_v43 = vpop.f32.mrb[6].mxu1 }
 0x1be   :  { %300 = vst [vmem:[#allocation7 + $0x78] sm:$0xff] %v387_v43  ;;  %v276_v44 = vpop.f32.mrb[7].mxu1 }
 0x1bf   :  { %299 = vst [vmem:[#allocation7 + $0x70] sm:$0xff] %v276_v44 }
 0x1c0   :  { %457 = shalt.err (!%p454_p6)
}
 0x1c1   :  { %s458_s11 = scalar_lea.hbm %s562_s2, 2048 }
 0x1c2   :  { %p459_p7 = scmp.ne.s32.totalorder %s562_s2, %s458_s11  ;;  %p462_p8 = scmp.lt.u32.totalorder %s458_s11, %s562_s2 }
 0x1c4   :  { %p464_p9 = pnand %p462_p8, %p459_p7 }
 0x1c6   :  { %467 = shalt.err (!%p464_p9)
}
 0x1c7   :  { %312 = dma.vmem_to_hbm [thread:$0]  %s307_s7, 2048, %s562_s2, [#allocation4], %s476_s0, %s476_s0, %s477_s4  }
 0x1c8   :  { %472 = dma.done.wait [#allocation4], 2048  }
 0x1c9   :  { %473 = vsyncadd [#allocation4], 4294965248 }
 0x1ca   :  { %316 = vsyncpa [#allocation3], 1 }
 0x1cb   :  { %317 = vsyncpa [#allocation6], 1 }
 0x1cc   :  { %318 = vsyncpa [#allocation4], 1 }

</bundles_post_ra>
